<compile_context>
chip_gen: v6e
topology: v6e:2x2x1
jax: 0.10.0
libtpu: 0.0.40
codegen_flags: <defaults>
</compile_context>

<pallas_src>
import functools

import jax
import jax.numpy as jnp
from jax.experimental import pallas as pl
from jax.experimental.pallas import tpu as pltpu


def _round_up(v, m):
    return ((v + m - 1) // m) * m


def _fused_graphsage_kernel(
    a_ref,      # (tm, N) f32  row tile of row-normalized adjacency
    x_ref,      # (N, F) f32   full node features (resident)
    w1_ref,     # (2F, Hpad)   vstack([W1_l, W1_r]), zero-padded columns
    b1_ref,     # (1, Hpad)
    w2_ref,     # (Hpad, 2*Cpad) hstack([W2_l_pad, W2_r_pad])
    b2_ref,     # (1, Cpad)
    o_ref,      # (tm, Cpad)   log-probabilities (padded class lanes = -inf)
    p_ref,      # scratch (N, Cpad): P = H @ W2_l
    r_ref,      # scratch (N, Cpad): R = H @ W2_r + b2
    *,
    tm,
    num_classes,
    c_pad,
):
    phase = pl.program_id(0)
    i = pl.program_id(1)
    row0 = pl.multiple_of(i * tm, tm)

    @pl.when(phase == 0)
    def _layer1():
        # --- layer 1: h = relu(A_i @ X @ W1_l + X_i @ W1_r + b1) ---
        a = a_ref[...].astype(jnp.bfloat16)
        x = x_ref[...].astype(jnp.bfloat16)
        agg = jnp.dot(a, x, preferred_element_type=jnp.float32)          # (tm, F)
        x_root = x_ref[pl.ds(row0, tm), :]                               # (tm, F)
        # merged projection: one MXU call with doubled K
        z = jnp.concatenate([agg, x_root.astype(jnp.float32)], axis=1)   # (tm, 2F)
        h = jnp.dot(z.astype(jnp.bfloat16), w1_ref[...].astype(jnp.bfloat16),
                    preferred_element_type=jnp.float32) + b1_ref[...]
        h = jnp.maximum(h, 0.0)                                          # (tm, Hpad)
        # TODO(synk): training-mode dropout (p=0.5) via pltpu.prng_seed/prng_random_bits;
        # eval mode is identity, matching F.dropout(x, training=False).

        # --- layer-2 projections, merged (H @ [W2_l | W2_r]) and cached row-wise ---
        pr = jnp.dot(h.astype(jnp.bfloat16), w2_ref[...].astype(jnp.bfloat16),
                     preferred_element_type=jnp.float32)                 # (tm, 2*Cpad)
        p_ref[pl.ds(row0, tm), :] = pr[:, :c_pad]
        r_ref[pl.ds(row0, tm), :] = pr[:, c_pad:] + b2_ref[...]
        # keep the phase-0 output writeback deterministic (overwritten in phase 1)
        o_ref[...] = jnp.zeros_like(o_ref)

    @pl.when(phase == 1)
    def _layer2():
        # --- layer 2 (reordered): logits_i = A_i @ (H @ W2_l) + H_i @ W2_r + b2 ---
        a = a_ref[...].astype(jnp.bfloat16)
        p_all = p_ref[...].astype(jnp.bfloat16)                          # (N, Cpad)
        logits = jnp.dot(a, p_all, preferred_element_type=jnp.float32)   # (tm, Cpad)
        logits = logits + r_ref[pl.ds(row0, tm), :]
        # mask padded class lanes before log_softmax so rows still exp-sum to 1
        lane = jax.lax.broadcasted_iota(jnp.int32, logits.shape, 1)
        logits = jnp.where(lane < num_classes, logits, -jnp.inf)
        m = jnp.max(logits, axis=1, keepdims=True)
        s = logits - m
        out = s - jnp.log(jnp.sum(jnp.exp(s), axis=1, keepdims=True))
        o_ref[...] = out.astype(o_ref.dtype)


def graphsage_forward(a, x, w1_cat, b1_pad, w2_cat, b2_pad, *, num_classes, c_pad, tm):
    n, f = x.shape
    h_pad = w1_cat.shape[1]
    assert n % tm == 0
    grid = (2, n // tm)  # (phase, row tile) — phase outer so layer 1 finishes first

    kernel = functools.partial(
        _fused_graphsage_kernel, tm=tm, num_classes=num_classes, c_pad=c_pad
    )
    out_pad = pl.pallas_call(
        kernel,
        out_shape=jax.ShapeDtypeStruct((n, c_pad), jnp.float32),
        grid_spec=pltpu.PrefetchScalarGridSpec(
            num_scalar_prefetch=0,
            grid=grid,
            in_specs=[
                pl.BlockSpec((tm, n), lambda p, i: (i, 0)),              # A row tile
                pl.BlockSpec((n, f), lambda p, i: (0, 0)),               # X (resident)
                pl.BlockSpec((2 * f, h_pad), lambda p, i: (0, 0)),       # W1_cat
                pl.BlockSpec((1, h_pad), lambda p, i: (0, 0)),           # b1
                pl.BlockSpec((h_pad, 2 * c_pad), lambda p, i: (0, 0)),   # W2_cat
                pl.BlockSpec((1, c_pad), lambda p, i: (0, 0)),           # b2
            ],
            out_specs=pl.BlockSpec((tm, c_pad), lambda p, i: (i, 0)),
            scratch_shapes=[
                pltpu.VMEM((n, c_pad), jnp.float32),  # P = H @ W2_l
                pltpu.VMEM((n, c_pad), jnp.float32),  # R = H @ W2_r + b2
            ],
        ),
        compiler_params=pltpu.CompilerParams(
            # Row axis must be "arbitrary": phase 1 consumes P/R rows produced by ALL
            # phase-0 row tiles through per-core VMEM scratch.
            dimension_semantics=("arbitrary", "arbitrary"),
        ),
    )(a, x, w1_cat, b1_pad, w2_cat, b2_pad)
    return out_pad[:, :num_classes]


def build_normalized_adjacency(edge_index, num_nodes):
    """Dense row-normalized adjacency: A[dst, src] = 1/deg_in(dst)."""
    src = edge_index[0]
    dst = edge_index[1]
    a = jnp.zeros((num_nodes, num_nodes), jnp.float32)
    a = a.at[dst, src].add(1.0)
    deg = jnp.clip(jnp.sum(a, axis=1, keepdims=True), 1.0, None)
    return a / deg  # nodes with no incoming edges aggregate to 0
    # TODO(synk): block-sparse / CSR formulation via PrefetchScalarGridSpec row offsets
    # for large graphs; dense A is only sensible at toy N.


class GraphSAGEPallas:
    """Mirror of the PyTorch GraphSAGE module (deterministic synthetic init)."""

    def __init__(self, num_features, num_classes, hidden=64, key=None):
        if key is None:
            key = jax.random.PRNGKey(0)
        k1, k2, k3, k4 = jax.random.split(key, 4)

        def glorot(k, fan_in, fan_out):
            limit = (6.0 / (fan_in + fan_out)) ** 0.5
            return jax.random.uniform(
                k, (fan_in, fan_out), jnp.float32, minval=-limit, maxval=limit
            )

        self.num_features = num_features
        self.num_classes = num_classes
        self.hidden = hidden

        # raw parameters (used by the pure-JAX reference)
        self.w1_l = glorot(k1, num_features, hidden)   # applied to aggregated feats
        self.w1_r = glorot(k2, num_features, hidden)   # applied to root feats
        self.b1 = jnp.zeros((hidden,), jnp.float32)
        self.w2_l = glorot(k3, hidden, num_classes)
        self.w2_r = glorot(k4, hidden, num_classes)
        self.b2 = jnp.zeros((num_classes,), jnp.float32)

        # lane-dense packed/padded parameters for the kernel
        self.h_pad = _round_up(hidden, 128)
        self.c_pad = _round_up(num_classes, 128)

        def pad_cols(w, t):
            return jnp.pad(w, ((0, 0), (0, t - w.shape[1])))

        def pad_rows(w, t):
            return jnp.pad(w, ((0, t - w.shape[0]), (0, 0)))

        # layer 1: single (2F, Hpad) weight so concat([agg, x_root]) needs one matmul
        self.w1_cat = pad_cols(jnp.concatenate([self.w1_l, self.w1_r], axis=0), self.h_pad)
        self.b1_pad = pad_cols(self.b1.reshape(1, -1), self.h_pad)
        # layer 2: single (Hpad, 2*Cpad) weight = [W2_l_pad | W2_r_pad]
        w2_l_p = pad_rows(pad_cols(self.w2_l, self.c_pad), self.h_pad)
        w2_r_p = pad_rows(pad_cols(self.w2_r, self.c_pad), self.h_pad)
        self.w2_cat = jnp.concatenate([w2_l_p, w2_r_p], axis=1)
        self.b2_pad = pad_cols(self.b2.reshape(1, -1), self.c_pad)

    def __call__(self, x, edge_index):
        n = x.shape[0]
        a = build_normalized_adjacency(edge_index, n)
        # Row tile: deliberately small (8) so the toy N=16 graph still exercises a
        # multi-step pipelined grid. For real graphs pick the largest multiple of 8
        # (>=128 to fill the MXU M dim on v5e) that fits the per-generation VMEM budget.
        tm = 8 if (n % 8 == 0 and n > 8) else n
        return graphsage_forward(
            a, x, self.w1_cat, self.b1_pad, self.w2_cat, self.b2_pad,
            num_classes=self.num_classes, c_pad=self.c_pad, tm=tm,
        )

    def reference(self, x, edge_index):
        """Pure-JAX f32 reference of the original PyTorch forward."""
        a = build_normalized_adjacency(edge_index, x.shape[0])
        h = jnp.maximum(a @ x @ self.w1_l + x @ self.w1_r + self.b1, 0.0)
        logits = a @ h @ self.w2_l + h @ self.w2_r + self.b2
        return jax.nn.log_softmax(logits, axis=1)


if __name__ == "__main__":
    num_nodes = 16
    num_features = 32
    num_classes = 8

    key = jax.random.PRNGKey(0)
    kx, kmodel = jax.random.split(key)

    # deterministic node features
    x = jax.random.normal(kx, (num_nodes, num_features), jnp.float32)

    # deterministic small graph: bidirectional ring + chords -> edge_index [2, E]
    idx = jnp.arange(num_nodes)
    src = jnp.concatenate([idx, (idx + 1) % num_nodes, idx])
    dst = jnp.concatenate([(idx + 1) % num_nodes, idx, (idx + 5) % num_nodes])
    edge_index = jnp.stack([src, dst]).astype(jnp.int32)   # shape (2, 48)

    model = GraphSAGEPallas(num_features, num_classes, hidden=64, key=kmodel)
    logp = model(x, edge_index)
    jax.block_until_ready(logp)

    assert logp.shape == (num_nodes, num_classes)
    # rows of log_softmax must exp-sum to 1 (padded class lanes were masked to -inf)
    row_sums = jnp.exp(logp).sum(axis=1)
    assert bool(jnp.allclose(row_sums, 1.0, atol=1e-4))

    # compare against the pure-JAX f32 reference (kernel uses bf16 MXU inputs,
    # f32 accumulation -> loose tolerance)
    ref = model.reference(x, edge_index)
    max_err = float(jnp.max(jnp.abs(logp - ref)))
    assert max_err < 0.15, f"max |kernel - ref| = {max_err}"

    print("KERNEL_OK")
</pallas_src>

<mosaic_0001>
module attributes {stable_mosaic.version = 11 : i64} {
  func.func @_fused_graphsage_kernel(%arg0: i32, %arg1: i32, %arg2: memref<8x16xf32, #tpu.memory_space<vmem>>, %arg3: memref<16x32xf32, #tpu.memory_space<vmem>>, %arg4: memref<64x128xf32, #tpu.memory_space<vmem>>, %arg5: memref<1x128xf32, #tpu.memory_space<vmem>>, %arg6: memref<128x256xf32, #tpu.memory_space<vmem>>, %arg7: memref<1x128xf32, #tpu.memory_space<vmem>>, %arg8: memref<8x128xf32, #tpu.memory_space<vmem>>, %arg9: memref<16x128xf32, #tpu.memory_space<vmem>>, %arg10: memref<16x128xf32, #tpu.memory_space<vmem>>) attributes {dimension_semantics = [#tpu.dimension_semantics<arbitrary>, #tpu.dimension_semantics<arbitrary>], iteration_bounds = array<i64: 2, 2>, scalar_prefetch = 0 : i64, scratch_operands = 2 : i64, tpu.core_type = #tpu.core_type<tc>, window_params = [{transform_indices = @transform_0, window_bounds = array<i64: 8, 16>}, {pipeline_mode = #tpu.pipeline_mode<synchronous>, transform_indices = @transform_1, window_bounds = array<i64: 16, 32>}, {pipeline_mode = #tpu.pipeline_mode<synchronous>, transform_indices = @transform_2, window_bounds = array<i64: 64, 128>}, {pipeline_mode = #tpu.pipeline_mode<synchronous>, transform_indices = @transform_3, window_bounds = array<i64: 1, 128>}, {pipeline_mode = #tpu.pipeline_mode<synchronous>, transform_indices = @transform_4, window_bounds = array<i64: 128, 256>}, {pipeline_mode = #tpu.pipeline_mode<synchronous>, transform_indices = @transform_5, window_bounds = array<i64: 1, 128>}, {transform_indices = @transform_6, window_bounds = array<i64: 8, 128>}]} {
    %c8_i32 = arith.constant 8 : i32
    %0 = arith.muli %arg1, %c8_i32 : i32
    %1 = tpu.assume_multiple %0, 8 : i32
    %c0_i32 = arith.constant 0 : i32
    %2 = arith.cmpi eq, %arg0, %c0_i32 : i32
    %3 = arith.extui %2 : i1 to i32
    %c0_i32_0 = arith.constant 0 : i32
    %4 = arith.cmpi ne, %3, %c0_i32_0 : i32
    scf.if %4 {
      %c0 = arith.constant 0 : index
      %c0_2 = arith.constant 0 : index
      %8 = vector.load %arg2[%c0, %c0_2] : memref<8x16xf32, #tpu.memory_space<vmem>>, vector<8x16xf32>
      %9 = arith.truncf %8 : vector<8x16xf32> to vector<8x16xbf16>
      %c0_3 = arith.constant 0 : index
      %c0_4 = arith.constant 0 : index
      %10 = vector.load %arg3[%c0_3, %c0_4] : memref<16x32xf32, #tpu.memory_space<vmem>>, vector<16x32xf32>
      %11 = arith.truncf %10 : vector<16x32xf32> to vector<16x32xbf16>
      %cst = arith.constant dense<0.000000e+00> : vector<8x32xf32>
      %12 = tpu.matmul %9, %11, %cst {dimension_numbers = #tpu.dot_dimension_numbers<[1], [0], [0], [1], [0, 0, 1, 1], [], []>} : vector<8x16xbf16>, vector<16x32xbf16>, vector<8x32xf32> -> vector<8x32xf32>
      %13 = arith.index_cast %1 : i32 to index
      %c0_5 = arith.constant 0 : index
      %14 = vector.load %arg3[%13, %c0_5] : memref<16x32xf32, #tpu.memory_space<vmem>>, vector<8x32xf32>
      %15 = tpu.concatenate %12, %14 in 1 : vector<8x32xf32>, vector<8x32xf32> -> vector<8x64xf32>
      %16 = arith.truncf %15 : vector<8x64xf32> to vector<8x64xbf16>
      %c0_6 = arith.constant 0 : index
      %c0_7 = arith.constant 0 : index
      %17 = vector.load %arg4[%c0_6, %c0_7] : memref<64x128xf32, #tpu.memory_space<vmem>>, vector<64x128xf32>
      %18 = arith.truncf %17 : vector<64x128xf32> to vector<64x128xbf16>
      %cst_8 = arith.constant dense<0.000000e+00> : vector<8x128xf32>
      %19 = tpu.matmul %16, %18, %cst_8 {dimension_numbers = #tpu.dot_dimension_numbers<[1], [0], [0], [1], [0, 0, 1, 1], [], []>} : vector<8x64xbf16>, vector<64x128xbf16>, vector<8x128xf32> -> vector<8x128xf32>
      %c0_9 = arith.constant 0 : index
      %c0_10 = arith.constant 0 : index
      %20 = vector.load %arg5[%c0_9, %c0_10] : memref<1x128xf32, #tpu.memory_space<vmem>>, vector<1x128xf32>
      %21 = vector.broadcast %20 : vector<1x128xf32> to vector<8x128xf32>
      %22 = arith.addf %19, %21 : vector<8x128xf32>
      %cst_11 = arith.constant 0.000000e+00 : f32
      %23 = vector.broadcast %cst_11 : f32 to vector<8x128xf32>
      %24 = arith.maximumf %22, %23 : vector<8x128xf32>
      %25 = arith.truncf %24 : vector<8x128xf32> to vector<8x128xbf16>
      %c0_12 = arith.constant 0 : index
      %c0_13 = arith.constant 0 : index
      %26 = vector.load %arg6[%c0_12, %c0_13] : memref<128x256xf32, #tpu.memory_space<vmem>>, vector<128x256xf32>
      %27 = arith.truncf %26 : vector<128x256xf32> to vector<128x256xbf16>
      %cst_14 = arith.constant dense<0.000000e+00> : vector<8x256xf32>
      %28 = tpu.matmul %25, %27, %cst_14 {dimension_numbers = #tpu.dot_dimension_numbers<[1], [0], [0], [1], [0, 0, 1, 1], [], []>} : vector<8x128xbf16>, vector<128x256xbf16>, vector<8x256xf32> -> vector<8x256xf32>
      %29 = vector.extract_strided_slice %28 {offsets = [0, 0], sizes = [8, 128], strides = [1, 1]} : vector<8x256xf32> to vector<8x128xf32>
      %30 = arith.index_cast %1 : i32 to index
      %c0_15 = arith.constant 0 : index
      %31 = vector.load %arg9[%30, %c0_15] : memref<16x128xf32, #tpu.memory_space<vmem>>, vector<8x128xf32>
      tpu.vector_store %arg9[%30, %c0_15], %29 {strides = array<i32>} : memref<16x128xf32, #tpu.memory_space<vmem>>, vector<8x128xf32>,
      %32 = vector.extract_strided_slice %28 {offsets = [0, 128], sizes = [8, 128], strides = [1, 1]} : vector<8x256xf32> to vector<8x128xf32>
      %c0_16 = arith.constant 0 : index
      %c0_17 = arith.constant 0 : index
      %33 = vector.load %arg7[%c0_16, %c0_17] : memref<1x128xf32, #tpu.memory_space<vmem>>, vector<1x128xf32>
      %34 = vector.broadcast %33 : vector<1x128xf32> to vector<8x128xf32>
      %35 = arith.addf %32, %34 : vector<8x128xf32>
      %36 = arith.index_cast %1 : i32 to index
      %c0_18 = arith.constant 0 : index
      %37 = vector.load %arg10[%36, %c0_18] : memref<16x128xf32, #tpu.memory_space<vmem>>, vector<8x128xf32>
      tpu.vector_store %arg10[%36, %c0_18], %35 {strides = array<i32>} : memref<16x128xf32, #tpu.memory_space<vmem>>, vector<8x128xf32>,
      %cst_19 = arith.constant 0.000000e+00 : f32
      %38 = vector.broadcast %cst_19 : f32 to vector<8x128xf32>
      %c0_20 = arith.constant 0 : index
      %c0_21 = arith.constant 0 : index
      %39 = vector.load %arg8[%c0_20, %c0_21] : memref<8x128xf32, #tpu.memory_space<vmem>>, vector<8x128xf32>
      tpu.vector_store %arg8[%c0_20, %c0_21], %38 {strides = array<i32>} : memref<8x128xf32, #tpu.memory_space<vmem>>, vector<8x128xf32>,
    } else {
    }
    %c1_i32 = arith.constant 1 : i32
    %5 = arith.cmpi eq, %arg0, %c1_i32 : i32
    %6 = arith.extui %5 : i1 to i32
    %c0_i32_1 = arith.constant 0 : i32
    %7 = arith.cmpi ne, %6, %c0_i32_1 : i32
    scf.if %7 {
      %c0 = arith.constant 0 : index
      %c0_2 = arith.constant 0 : index
      %8 = vector.load %arg2[%c0, %c0_2] : memref<8x16xf32, #tpu.memory_space<vmem>>, vector<8x16xf32>
      %9 = arith.truncf %8 : vector<8x16xf32> to vector<8x16xbf16>
      %c0_3 = arith.constant 0 : index
      %c0_4 = arith.constant 0 : index
      %10 = vector.load %arg9[%c0_3, %c0_4] : memref<16x128xf32, #tpu.memory_space<vmem>>, vector<16x128xf32>
      %11 = arith.truncf %10 : vector<16x128xf32> to vector<16x128xbf16>
      %cst = arith.constant dense<0.000000e+00> : vector<8x128xf32>
      %12 = tpu.matmul %9, %11, %cst {dimension_numbers = #tpu.dot_dimension_numbers<[1], [0], [0], [1], [0, 0, 1, 1], [], []>} : vector<8x16xbf16>, vector<16x128xbf16>, vector<8x128xf32> -> vector<8x128xf32>
      %13 = arith.index_cast %1 : i32 to index
      %c0_5 = arith.constant 0 : index
      %14 = vector.load %arg10[%13, %c0_5] : memref<16x128xf32, #tpu.memory_space<vmem>>, vector<8x128xf32>
      %15 = arith.addf %12, %14 : vector<8x128xf32>
      %16 = tpu.iota {dimensions = array<i32: 1>} : vector<8x128xi32>
      %c8_i32_6 = arith.constant 8 : i32
      %17 = vector.broadcast %c8_i32_6 : i32 to vector<8x128xi32>
      %18 = arith.cmpi slt, %16, %17 : vector<8x128xi32>
      %cst_7 = arith.constant 0xFF800000 : f32
      %19 = vector.broadcast %cst_7 : f32 to vector<8x128xf32>
      %20 = arith.select %18, %15, %19 : vector<8x128xi1>, vector<8x128xf32>
      %cst_8 = arith.constant dense<0xFF800000> : vector<8xf32>
      %21 = vector.multi_reduction <maximumf>, %20, %cst_8 [1] : vector<8x128xf32> to vector<8xf32>
      %22 = vector.shape_cast %21 : vector<8xf32> to vector<8x1xf32>
      %23 = vector.broadcast %22 : vector<8x1xf32> to vector<8x128xf32>
      %24 = arith.subf %20, %23 : vector<8x128xf32>
      %25 = math.exp %24 : vector<8x128xf32>
      %cst_9 = arith.constant dense<0.000000e+00> : vector<8xf32>
      %26 = vector.multi_reduction <add>, %25, %cst_9 [1] : vector<8x128xf32> to vector<8xf32>
      %27 = vector.shape_cast %26 : vector<8xf32> to vector<8x1xf32>
      %28 = math.log %27 : vector<8x1xf32>
      %29 = vector.broadcast %28 : vector<8x1xf32> to vector<8x128xf32>
      %30 = arith.subf %24, %29 : vector<8x128xf32>
      %c0_10 = arith.constant 0 : index
      %c0_11 = arith.constant 0 : index
      %31 = vector.load %arg8[%c0_10, %c0_11] : memref<8x128xf32, #tpu.memory_space<vmem>>, vector<8x128xf32>
      tpu.vector_store %arg8[%c0_10, %c0_11], %30 {strides = array<i32>} : memref<8x128xf32, #tpu.memory_space<vmem>>, vector<8x128xf32>,
    } else {
    }
    return
  }
  func.func @transform_0(%arg0: i32, %arg1: i32) -> (i32, i32) {
    %c0_i32 = arith.constant 0 : i32
    %c0_i32_0 = arith.constant 0 : i32
    return %arg1, %c0_i32 : i32, i32
  }
  func.func @transform_1(%arg0: i32, %arg1: i32) -> (i32, i32) {
    %c0_i32 = arith.constant 0 : i32
    %c0_i32_0 = arith.constant 0 : i32
    %c0_i32_1 = arith.constant 0 : i32
    return %c0_i32, %c0_i32_0 : i32, i32
  }
  func.func @transform_2(%arg0: i32, %arg1: i32) -> (i32, i32) {
    %c0_i32 = arith.constant 0 : i32
    %c0_i32_0 = arith.constant 0 : i32
    %c0_i32_1 = arith.constant 0 : i32
    return %c0_i32, %c0_i32_0 : i32, i32
  }
  func.func @transform_3(%arg0: i32, %arg1: i32) -> (i32, i32) {
    %c0_i32 = arith.constant 0 : i32
    %c0_i32_0 = arith.constant 0 : i32
    %c0_i32_1 = arith.constant 0 : i32
    return %c0_i32, %c0_i32_0 : i32, i32
  }
  func.func @transform_4(%arg0: i32, %arg1: i32) -> (i32, i32) {
    %c0_i32 = arith.constant 0 : i32
    %c0_i32_0 = arith.constant 0 : i32
    %c0_i32_1 = arith.constant 0 : i32
    return %c0_i32, %c0_i32_0 : i32, i32
  }
  func.func @transform_5(%arg0: i32, %arg1: i32) -> (i32, i32) {
    %c0_i32 = arith.constant 0 : i32
    %c0_i32_0 = arith.constant 0 : i32
    %c0_i32_1 = arith.constant 0 : i32
    return %c0_i32, %c0_i32_0 : i32, i32
  }
  func.func @transform_6(%arg0: i32, %arg1: i32) -> (i32, i32) {
    %c0_i32 = arith.constant 0 : i32
    %c0_i32_0 = arith.constant 0 : i32
    return %arg1, %c0_i32 : i32, i32
  }
}

</mosaic_0001>

<bundles_post_ra>
// kernel: tpu_custom_call.1
= control target key start
LH: loop header
LB: loop body
LE: loop exit
PB: predicated region body
PF: predicated region fallthrough
CT: control target
= control target key end

     0   :  { %s1429_s0 = inlined_call_operand.hbm [shape: f32[16,16], index: 0, kind: input, shape index: {}]   ;;  %s1430_s1 = inlined_call_operand.hbm [shape: f32[16,32], index: 1, kind: input, shape index: {}]   ;;  %s1431_s2 = inlined_call_operand.hbm [shape: f32[64,128], index: 2, kind: input, shape index: {}]   ;;  %s1432_s3 = inlined_call_operand.vmem [shape: f32[1,128], index: 3, kind: input, shape index: {}]   ;;  %s1433_s4 = inlined_call_operand.hbm [shape: f32[128,256], index: 4, kind: input, shape index: {}]   ;;  %s1434_s5 = inlined_call_operand.vmem [shape: f32[1,128], index: 5, kind: input, shape index: {}]   ;;  %s1435_s6 = inlined_call_operand.hbm [shape: f32[16,128], index: 6, kind: output, shape index: {}]  }
   0x1   :  { %1441 = sst [smem:[#allocation19_spill]] %s1430_s1 }
   0x2   :  { %1442 = sst [smem:[#allocation20_spill]] %s1431_s2 }
   0x3   :  { %1443 = sst [smem:[#allocation21_spill]] %s1433_s4 }
   0x4   :  { %11 = vsyncpa [#allocation5], 0 }
   0x5   :  { %13 = vsyncpa [#allocation5 + $0x1], 0 }
   0x6   :  { %14 = vsyncpa [#allocation8], 0 }
   0x7   :  { %15 = vsyncpa [#allocation11], 0 }
   0x8   :  { %16 = vsyncpa [#allocation6], 0 }
   0x9   :  { %18 = vsyncpa [#allocation6 + $0x1], 0  ;;  %s1201_s21 = smov 0   ;;  %s1203_s22 = smov 0  }
   0xa   :  { %s1205_s23 = smov 0   ;;  %s1207_s24 = smov 0  }
   0xb   :  { %s1209_s25 = smov 0   ;;  %s1211_s26 = smov 0  }
   0xc   :  { %s1213_s27 = smov 0   ;;  %s1215_s28 = smov 0  }
   0xd LB: > { %s756_s29 = sadd.s32 4294967295, %s1149_s28   ;;  %s757_s30 = sadd.s32 4294967294, %s1149_s28   ;;  %s1149_s28 = sphi %s1215_s28, %s24_s28   ;;  %s1145_s27 = sphi %s1213_s27, %s1469_s27   ;;  %s1141_s26 = sphi %s1211_s26, %s1468_s26   ;;  %s1137_s25 = sphi %s1209_s25, %s1467_s25   ;;  %s1133_s24 = sphi %s1207_s24, %s1466_s24   ;;  %s1129_s23 = sphi %s1205_s23, %s1465_s23   ;;  %s1125_s22 = sphi %s1203_s22, %s1464_s22   ;;  %s1121_s21 = sphi %s1201_s21, %s1463_s21  }
   0xe   : > { %p56_p0 = scmp.ne.s32.totalorder %s1125_s22, %s1121_s21  ;;  %p1245_p1 = scmp.eq.s32.totalorder %s756_s29, 0 }
   0xf   : > { %p1249_p2 = scmp.eq.s32.totalorder %s756_s29, 3  ;;  %p191_p3 = scmp.eq.s32.totalorder %s757_s30, 3 }
  0x10   : > { %s1444_s7 = scalar_select %p1245_p1, 1, 0 }
  0x11   : > { %p1255_p4 = por %p1245_p1, %p56_p0  ;;  %p758_p5 = scmp.ge.s32.totalorder %s1149_s28, 1 }
  0x12   : > { %p1260_p6 = por %p191_p3, %p56_p0  ;;  %p198_p7 = scmp.lt.s32.totalorder %s1149_s28, 5 }
  0x13   : > { %s1446_s9 = scalar_select %p1255_p4, 1, 0 }
  0x14   : > { %s1447_s10 = scalar_select %p1260_p6, 1, 0 }
  0x15   : > { %p1265_p8 = pnand %p758_p5, %p198_p7  ;;  %s1151_s12 = smov [#allocation7]  }
  0x16   : > { %s210_s13 = sshll.u32 %s1151_s12, 4  ;;  %s1152_s15 = smov [#allocation9]   ;;  %s211_s13 = int_to_ptr.vmem [resolvable:$true] %s210_s13 }
  0x17   : > { %s1448_s11 = scalar_select %p1265_p8, 1, 0 }
  0x18   : > { %p832_p9 = pneg %p1265_p8  ;;  %s223_s16 = sshll.u32 %s1152_s15, 4  ;;  %s224_s16 = int_to_ptr.vmem [resolvable:$true] %s223_s16 }
  0x19   : > { %s1153_s17 = smov [#allocation10]   ;;  %s950_s19 = scalar_lea.vmem %s211_s13, 256 }
  0x1a   : > { %p1273_p10 = pnand %p832_p9, %p1245_p1  ;;  %s239_s18 = sshll.u32 %s1153_s17, 4  ;;  %s240_s18 = int_to_ptr.vmem [resolvable:$true] %s239_s18 }
  0x1b   : > { %p951_p12 = scmp.ne.s32.totalorder %s211_s13, %s950_s19  ;;  %p958_p3 = scmp.lt.s32.totalorder %s211_s13, %s211_s13 }
  0x1c   : > { %p941_p11 = pneg %p1273_p10  ;;  %p959_p5 = scmp.lt.s32.totalorder %s950_s19, %s950_s19 }
  0x1e   : > { %p953_p13 = pnand %p951_p12, %p941_p11  ;;  %p960_p7 = por %p959_p5, %p958_p3 }
  0x20   : > { %p954_p0 = pneg %p953_p13 }
  0x22   : > { %p961_p9 = pnand %p960_p7, %p954_p0 }
  0x24   : > { %964 = shalt.err (!%p961_p9)
}
  0x25   : > { %s1154_s20 = smov 128   ;;  %s1155_s29 = smov 8  }
  0x26   : > { %s1450_s1 = sld [smem:[#allocation19_spill]]  ;;  %s976_s15 = scalar_lea.vmem %s224_s16, 1024 }
  0x27   : > { %p977_p6 = scmp.ne.s32.totalorder %s224_s16, %s976_s15  ;;  %p984_p1 = scmp.lt.s32.totalorder %s224_s16, %s224_s16 }
  0x28   : > { %p985_p4 = scmp.lt.s32.totalorder %s976_s15, %s976_s15 }
  0x29   : > { %p979_p12 = pnand %p977_p6, %p941_p11 }
  0x2a   : > { %p986_p3 = por %p985_p4, %p984_p1 }
  0x2b   : > { %p980_p13 = pneg %p979_p12 }
  0x2c   : > { %835 = dma.hbm_to_vmem [thread:$0]  (!%p1273_p10), %s1450_s1, 256, %s211_s13, [#allocation8], %s1154_s20, %s1154_s20, %s1155_s29  }
  0x2d   : > { %p987_p0 = pnand %p986_p3, %p980_p13 }
  0x2f   : > { %990 = shalt.err (!%p987_p0)
}
  0x30   : > { %s1451_s2 = sld [smem:[#allocation20_spill]]  ;;  %s1002_s13 = scalar_lea.vmem %s240_s18, 4096 }
  0x31   : > { %p1003_p5 = scmp.ne.s32.totalorder %s240_s18, %s1002_s13  ;;  %p1010_p9 = scmp.lt.s32.totalorder %s240_s18, %s240_s18 }
  0x32   : > { %p1011_p12 = scmp.lt.s32.totalorder %s1002_s13, %s1002_s13 }
  0x33   : > { %p1005_p7 = pnand %p1003_p5, %p941_p11 }
  0x34   : > { %p1012_p8 = por %p1011_p12, %p1010_p9 }
  0x35   : > { %p1006_p6 = pneg %p1005_p7 }
  0x36   : > { %838 = dma.hbm_to_vmem [thread:$0]  (!%p1273_p10), %s1451_s2, 1024, %s224_s16, [#allocation8], %s1154_s20, %s1154_s20, %s1155_s29  }
  0x37   : > { %p1013_p1 = pnand %p1012_p8, %p1006_p6 }
  0x39   : > { %1016 = shalt.err (!%p1013_p1)
}
  0x3a   : > { %s1156_s30 = smov 256   ;;  %s1157_s16 = smov 16  }
  0x3b   : > { %s1452_s4 = sld [smem:[#allocation21_spill]]  ;;  %s33_s12 = sadd.s32 1, %s1141_s26 }
  0x3c   : > { %p34_p4 = scmp.ge.s32.totalorder %s33_s12, 2  ;;  %s36_s15 = sadd.s32 1, %s1145_s27 }
  0x3d   : > { %s43_s17 = sadd.s32 1, %s1129_s23  ;;  %p50_p8 = scmp.ne.s32.totalorder %s1129_s23, %s1125_s22 }
  0x3e   : > { %s1471_s12 = smov (%p34_p4, %s33_s12), 0  ;;  %s1473_s15 = smov (!%p34_p4, %s36_s15), %s1145_s27 }
  0x3f   : > { %1453 = sst [smem:[#allocation17_spill]] %s1471_s12  ;;  %s40_s19 = ssub.s32 %s1141_s26, %s1471_s12 }
  0x40   : > { %p51_p11 = scmp.eq.s32.totalorder %s1149_s28, 0  ;;  %p38_p13 = scmp.ge.s32.totalorder %s1473_s15, 2 }
  0x41   : > { %841 = dma.hbm_to_vmem [thread:$0]  (!%p1273_p10), %s1452_s4, 4096, %s240_s18, [#allocation11], %s1156_s30, %s1156_s30, %s1157_s16  }
  0x42   : > { %p41_p3 = scmp.eq.s32.totalorder %s40_s19, 0  ;;  %p52_p0 = por %p51_p11, %p50_p8 }
  0x43   : > { %p1316_p5 = por %p1249_p2, %p50_p8  ;;  %s1475_s15 = smov (%p38_p13, %s1473_s15), 0 }
  0x44   : > { %1455 = sst [smem:[#allocation18_spill]] %s1475_s15  ;;  %p853_p10 = scmp.lt.s32.totalorder %s1149_s28, 4 }
  0x45   : > { %s1323_s18 = scalar_select %p41_p3, %s1129_s23, %s43_s17  }
  0x46   : > { %s256_s13 = sand.u32 1, %s1129_s23   ;;  %s764_s16 = sshll.u32 %s1141_s26, 7 }
  0x47   : > { %s763_s30 = sshll.u32 %s256_s13, 3  ;;  %s265_s1 = scalar_lea.hbm %s1429_s0, %s764_s16 }
  0x48   : > { %s260_s2 = scalar_lea.vmem [#allocation4], %s763_s30  ;;  %p1331_p7 = pnand %p853_p10, %p52_p0 }
  0x49   : > { %s267_s19 = sshll.u32 %s260_s2, 4  ;;  %s257_s4 = scalar_lea.sflag [#allocation5], %s256_s13  ;;  %s268_s19 = int_to_ptr.vmem [resolvable:$true] %s267_s19 }
  0x4a   : > { %p1019_p2 = pneg %p1331_p7  ;;  %s1030_s17 = scalar_lea.vmem %s268_s19, 128 }
  0x4b   : > { %p1031_p6 = scmp.ne.s32.totalorder %s268_s19, %s1030_s17  ;;  %s1158_s15 = smov [#allocation4]  }
  0x4c   : > { %s1035_s12 = sshll.u32 %s1158_s15, 4  ;;  %s1036_s12 = int_to_ptr.vmem [resolvable:$false] %s1035_s12 }
  0x4d   : > { %p1033_p9 = pnand %p1031_p6, %p1019_p2  ;;  %s1037_s20 = scalar_lea.vmem %s1036_s12, 256 }
  0x4e   : > { %p1038_p1 = scmp.lt.s32.totalorder %s268_s19, %s1036_s12  ;;  %p1039_p4 = scmp.lt.s32.totalorder %s1037_s20, %s1030_s17 }
  0x4f   : > { %p1034_p12 = pneg %p1033_p9 }
  0x50   : > { %p1040_p8 = por %p1039_p4, %p1038_p1 }
  0x52   : > { %p1041_p11 = pnand %p1040_p8, %p1034_p12 }
  0x54   : > { %1044 = shalt.err (!%p1041_p11)
}
  0x55   : > { %845 = dma.hbm_to_vmem [thread:$0]  (!%p1331_p7), %s265_s1, 128, %s268_s19, %s257_s4  }
  0x56   : > { %p1457_p13 = scmp.ne.s32.totalorder %s1448_s11, 0 }
  0x57   : > { %s1342_s2 = sand.u32 (!%p1457_p13), 1, %s1125_s22   ;;  %p1458_p3 = scmp.ne.s32.totalorder (!%p1457_p13), %s1446_s9, 0 }
  0x58   : > { %276 = sbr.rel (%p1457_p13) target bundleno = 1252 (0x4e4), region = 44  ;;  %s766_s15 = sshll.u32 (!%p1457_p13), %s1342_s2, 3 }
  0x59   : > { %s279_s13 = scalar_lea.sflag (!%p1457_p13), [#allocation5], %s1342_s2  ;;  %s1346_s30 = scalar_lea.vmem (!%p1457_p13), [#allocation4], %s766_s15 }
  0x5d   : > { %1104 = dma.done.wait (%p1458_p3), %s279_s13, 128  }
  0x5e   : > { %1106 = vsyncadd (%p1458_p3), %s279_s13, 4294967168  ;;  %p1459_p0 = scmp.ne.s32.totalorder %s1444_s7, 0 }
  0x60   : > { %1108 = dma.done.wait (%p1459_p0), [#allocation8], 1280  }
  0x61   : > { %1110 = vsyncadd (%p1459_p0), [#allocation8], 4294966016 }
  0x62   : > { %1112 = dma.done.wait (%p1459_p0), [#allocation11], 4096  }
  0x63   : > { %1114 = vsyncadd (%p1459_p0), [#allocation11], 4294963200  ;;  %s1361_s1 = sshll.u32 %s1133_s24, 3  ;;  %s1363_s4 = scalar_lea.vmem [#allocation12], %s766_s15 }
  0x64   : > { %p772_p10 = scmp.ne.s32.totalorder %s1137_s25, 0 }
  0x65   : > { %s378_s7 = scalar_lea.vmem (!%p772_p10), [#allocation7], %s1361_s1  ;;  %s1161_s9 = smov (!%p772_p10), 32  }
  0x66   : > { %328 = sbr.rel (%p772_p10) target bundleno = 707 (0x2c3), region = 64  ;;  %s541_s19 = scalar_lea.vmem (!%p772_p10), [#allocation2], %s1361_s1 }
  0x67   : > { %s551_s8 = scalar_lea.vmem (!%p772_p10), [#allocation3], %s1361_s1 }
  0x6b   : > { %v331_v0 = vld [vmem:[#allocation7] sm:$0xff]  ;;  %v332_v1 = vld [vmem:[#allocation7 + $0x8] sm:$0xff]  ;;  %v329_v2 = vld [vmem:[%s1346_s30] sm:$0xff]  ;;  %v1159_v3 = vmov 0.0   ;;  %vm1160_vm0 = vmmov 0   ;;  %vm334_vm1 = vcmask 130048  }
  0x6c   : > { %792 = vmatprep.subr.bf16.mxu1 %v1159_v3  ;;  %553 = vst [vmem:[%s1363_s4] sm:$0xff] %v1159_v3  ;;  %v333_v4 = vpack.c.bf16 %v332_v1, %v331_v0  ;;  %794 = vmatprep.mubr.msk.bf16.mxu1 %vm1160_vm0, %v1159_v3  ;;  %v393_v5 = vld [vmem:[#allocation9 + $0x30] sm:$0xff]  ;;  %v394_v6 = vld [vmem:[#allocation9 + $0x38] sm:$0xff]  ;;  %v330_v7 = vpack.c.bf16 %v329_v2, %v329_v2  ;;  %v379_v8 = vld [vmem:[%s378_s7] sm:$0xff]  ;;  %vm384_vm2 = vcmask 261120   ;;  %vm406_vm3 = vcmask 523264  }
  0x6d   : > { %381 = vrot.lane.b32.xlu0 %v379_v8, %s1161_s9  ;;  %v398_v9 = vpack.c.bf16 %v394_v6, %v393_v5  ;;  %v391_v10 = vld [vmem:[#allocation9 + $0x20] sm:$0xff]  ;;  %v392_v11 = vld [vmem:[#allocation9 + $0x28] sm:$0xff]  ;;  %v389_v13 = vld [vmem:[#allocation9 + $0x10] sm:$0xff] }
  0x6e   : > { %793 = vmatpush3.bf16.msra.mxu1 %v333_v4  ;;  %v397_v12 = vpack.c.bf16 %v392_v11, %v391_v10  ;;  %v390_v14 = vld [vmem:[#allocation9 + $0x18] sm:$0xff]  ;;  %v387_v16 = vld [vmem:[#allocation9] sm:$0xff]  ;;  %v388_v17 = vld [vmem:[#allocation9 + $0x8] sm:$0xff]  ;;  %v1162_v10 = vmov 0  }
  0x6f   : > { %798 = vmatprep.subr.bf16.mxu1 %v1159_v3  ;;  %v396_v15 = vpack.c.bf16 %v390_v14, %v389_v13  ;;  %v395_v18 = vpack.c.bf16 %v388_v17, %v387_v16  ;;  %v481_v19 = vld [vmem:[#allocation10 + $0xe8] sm:$0xff]  ;;  %v483_v20 = vld [vmem:[#allocation10 + $0xf8] sm:$0xff]  ;;  %v480_v21 = vld [vmem:[#allocation10 + $0xe0] sm:$0xff]  ;;  %532 = vmatprep.mubr.bf16.mxu0 %v1162_v10 }
  0x70   : > { %v499_v22 = vpack.c.bf16 %v483_v20, %v481_v19  ;;  %v482_v23 = vld [vmem:[#allocation10 + $0xf0] sm:$0xff]  ;;  %v477_v24 = vld [vmem:[#allocation10 + $0xc8] sm:$0xff]  ;;  %v479_v25 = vld [vmem:[#allocation10 + $0xd8] sm:$0xff] }
  0x71   : > { %795 = vmatmul.mubr.msk.bf16.vlgmr.msra.gmra.mxu1 %vm334_vm1, %v330_v7  ;;  %v498_v26 = vpack.c.bf16 %v482_v23, %v480_v21  ;;  %v497_v27 = vpack.c.bf16 %v479_v25, %v477_v24  ;;  %v476_v28 = vld [vmem:[#allocation10 + $0xc0] sm:$0xff]  ;;  %v478_v29 = vld [vmem:[#allocation10 + $0xd0] sm:$0xff]  ;;  %v473_v30 = vld [vmem:[#allocation10 + $0xa8] sm:$0xff] }
  0x72   : > { %799 = vmatpush3.bf16.msra.mxu1 %v398_v9  ;;  %806 = vmatprep.mubr.msk.bf16.mxu1 %vm1160_vm0, %v1159_v3  ;;  %v475_v31 = vld [vmem:[#allocation10 + $0xb8] sm:$0xff]  ;;  %v496_v32 = vpack.c.bf16 %v478_v29, %v476_v28  ;;  %v472_v34 = vld [vmem:[#allocation10 + $0xa0] sm:$0xff]  ;;  %v474_v35 = vld [vmem:[#allocation10 + $0xb0] sm:$0xff] }
  0x73   : > { %800 = vmatprep.subr.bf16.mxu1 %v1159_v3  ;;  %500 = vmatprep.subr.bf16.mxu0 %v499_v22  ;;  %v495_v33 = vpack.c.bf16 %v475_v31, %v473_v30  ;;  %v469_v36 = vld [vmem:[#allocation10 + $0x88] sm:$0xff]  ;;  %v471_v37 = vld [vmem:[#allocation10 + $0x98] sm:$0xff]  ;;  %v494_v38 = vpack.c.bf16 %v474_v35, %v472_v34  ;;  %v468_v40 = vld [vmem:[#allocation10 + $0x80] sm:$0xff] }
  0x74   : > { %501 = vmatpush1.bf16.msra.mxu0 %v498_v26  ;;  %v493_v39 = vpack.c.bf16 %v471_v37, %v469_v36  ;;  %v470_v41 = vld [vmem:[#allocation10 + $0x90] sm:$0xff]  ;;  %v465_v42 = vld [vmem:[#allocation10 + $0x68] sm:$0xff]  ;;  %v467_v43 = vld [vmem:[#allocation10 + $0x78] sm:$0xff] }
  0x75   : > { %502 = vmatprep.subr.bf16.mxu0 %v497_v27  ;;  %v492_v44 = vpack.c.bf16 %v470_v41, %v468_v40  ;;  %v491_v45 = vpack.c.bf16 %v467_v43, %v465_v42  ;;  %v464_v46 = vld [vmem:[#allocation10 + $0x60] sm:$0xff]  ;;  %v466_v47 = vld [vmem:[#allocation10 + $0x70] sm:$0xff]  ;;  %v461_v48 = vld [vmem:[#allocation10 + $0x48] sm:$0xff] }
  0x76   : > { %801 = vmatpush3.bf16.msra.mxu1 %v397_v12  ;;  %v463_v49 = vld [vmem:[#allocation10 + $0x58] sm:$0xff]  ;;  %v490_v50 = vpack.c.bf16 %v466_v47, %v464_v46  ;;  %v460_v52 = vld [vmem:[#allocation10 + $0x40] sm:$0xff]  ;;  %v462_v53 = vld [vmem:[#allocation10 + $0x50] sm:$0xff] }
  0x77   : > { %802 = vmatprep.subr.bf16.mxu1 %v1159_v3  ;;  %v489_v51 = vpack.c.bf16 %v463_v49, %v461_v48  ;;  %v457_v54 = vld [vmem:[#allocation10 + $0x28] sm:$0xff]  ;;  %v459_v55 = vld [vmem:[#allocation10 + $0x38] sm:$0xff]  ;;  %v488_v56 = vpack.c.bf16 %v462_v53, %v460_v52  ;;  %v456_v1 = vld [vmem:[#allocation10 + $0x20] sm:$0xff] }
  0x78   : > { %503 = vmatpush1.bf16.msra.mxu0 %v496_v32  ;;  %v487_v57 = vpack.c.bf16 %v459_v55, %v457_v54  ;;  %v458_v2 = vld [vmem:[#allocation10 + $0x30] sm:$0xff]  ;;  %v453_v4 = vld [vmem:[#allocation10 + $0x8] sm:$0xff]  ;;  %v455_v5 = vld [vmem:[#allocation10 + $0x18] sm:$0xff] }
  0x79   : > { %504 = vmatprep.subr.bf16.mxu0 %v495_v33  ;;  %v485_v6 = vpack.c.bf16 %v455_v5, %v453_v4  ;;  %v452_v7 = vld [vmem:[#allocation10] sm:$0xff]  ;;  %v454_v8 = vld [vmem:[#allocation10 + $0x10] sm:$0xff] }
  0x7a   : > { %803 = vmatpush3.bf16.msra.mxu1 %v396_v15  ;;  %v484_v9 = vpack.c.bf16 %v454_v8, %v452_v7  ;;  %v774_v11 = vld [vmem:[%s1432_s3] ss:$0 sm:$0xff] }
  0x7b   : > { %804 = vmatprep.subr.bf16.mxu1 %v1159_v3  ;;  %v486_v3 = vpack.c.bf16 %v458_v2, %v456_v1  ;;  %v776_v20 = vld [vmem:[%s1434_s5] ss:$0 sm:$0xff] }
  0x7c   : > { %505 = vmatpush1.bf16.msra.mxu0 %v494_v38 }
  0x7d   : > { %506 = vmatprep.subr.bf16.mxu0 %v493_v39 }
  0x7e   : > { %805 = vmatpush3.bf16.msra.mxu1 %v395_v18 }
  0x80   : > { %507 = vmatpush1.bf16.msra.mxu0 %v492_v44 }
  0x81   : > { %508 = vmatprep.subr.bf16.mxu0 %v491_v45 }
  0x84   : > { %509 = vmatpush1.bf16.msra.mxu0 %v490_v50 }
  0x85   : > { %510 = vmatprep.subr.bf16.mxu0 %v489_v51 }
  0x88   : > { %511 = vmatpush1.bf16.msra.mxu0 %v488_v56 }
  0x89   : > { %512 = vmatprep.subr.bf16.mxu0 %v487_v57 }
  0x8c   : > { %513 = vmatpush1.bf16.msra.mxu0 %v486_v3 }
  0x8d   : > { %514 = vmatprep.subr.bf16.mxu0 %v485_v6 }
  0x90   : > { %515 = vmatpush1.bf16.msra.mxu0 %v484_v9 }
  0xdf   : > { %v382_v58 = vpop.permute.xlu0 %381 }
 0x131   : > { %v372_v59 = vpop.f32.mrf.mxu1 }
 0x132   : > { %v385_v60 = vsel %vm384_vm2, %v372_v59, %v382_v58 }
 0x133   : > { %v386_v61 = vpack.c.bf16 %v385_v60, %v385_v60  ;;  %v796_v62 = vpop.f32.mrf.mxu1 }
 0x135   : > { %v375_v63 = vpop.f32.mrf.mxu1  ;;  %807 = vmatmul.mubr.msk.bf16.vlgmr.msra.gmra.mxu1 %vm406_vm3, %v386_v61 }
 0x137   : > { %v797_v0 = vpop.f32.mrf.mxu1 }
 0x1f5   : > { %v444_v12 = vpop.f32.mrf.mxu1 }
 0x1f6   : > { %v445_v13 = vadd.f32 %v774_v11, %v444_v12 }
 0x1f7   : > { %v808_v14 = vpop.f32.mrf.mxu1 }
 0x1f8   : > { %v450_v15 = vmax.f32 %v445_v13, 0.0 }
 0x1f9   : > { %v447_v16 = vpop.f32.mrf.mxu1 }
 0x1fa   : > { %v451_v17 = vpack.c.bf16 %v450_v15, %v450_v15 }
 0x1fb   : > { %v809_v18 = vpop.f32.mrf.mxu1 }
 0x1fc   : > { %533 = vmatmul.mubr.bf16.vlgmr.msra.gmra.mxu0 %v451_v17 }
 0x2bc   : > { %v534_v19 = vpop.f32.mrf.mxu0 }
 0x2bd   : > { %542 = vst [vmem:[%s541_s19] sm:$0xff] %v534_v19 }
 0x2be   : > { %v536_v21 = vpop.f32.mrf.mxu0 }
 0x2bf   : > { %v550_v22 = vadd.f32 %v776_v20, %v536_v21 }
 0x2c0   : > { %v538_v23 = vpop.f32.mrf.mxu0 }
 0x2c1   : > { %552 = vst [vmem:[%s551_s8] sm:$0xff] %v550_v22 }
 0x2c2   : > { %v539_v24 = vpop.f32.mrf.mxu0 }
 0x2c3 PF: > { %p777_p7 = scmp.ne.s32.totalorder %s1137_s25, 1 }
 0x2c4   : > { %s563_s17 = scalar_lea.vmem (!%p777_p7), [#allocation3], %s1361_s1 }
 0x2c5   : > { %557 = sbr.rel (%p777_p7) target bundleno = 1229 (0x4cd), region = 68 }
 0x2ca   : > { %v560_v25 = vld [vmem:[#allocation2] sm:$0xff]  ;;  %v561_v26 = vld [vmem:[#allocation2 + $0x8] sm:$0xff]  ;;  %v1163_v28 = vmov 0.0   ;;  %vm1164_vm4 = vmmov 0   ;;  %vm565_vm5 = vcmask 130048   ;;  %v609_v31 = vlaneseq }
 0x2cb   : > { %v558_v27 = vld [vmem:[%s1346_s30] sm:$0xff]  ;;  %810 = vmatprep.subr.bf16.mxu0 %v1163_v28  ;;  %v562_v29 = vpack.c.bf16 %v561_v26, %v560_v25  ;;  %812 = vmatprep.mubr.msk.bf16.mxu0 %vm1164_vm4, %v1163_v28 }
 0x2cc   : > { %v559_v30 = vpack.c.bf16 %v558_v27, %v558_v27  ;;  %v610_v32 = vand.u32 127, %v609_v31  ;;  %v564_v33 = vld [vmem:[%s563_s17] sm:$0xff] }
 0x2cd   : > { %811 = vmatpush3.bf16.msra.mxu0 %v562_v29 }
 0x2ce   : > { %vm611_vm6 = vcmp.lt.s32.totalorder %v610_v32, 8 }
 0x2d0   : > { %813 = vmatmul.mubr.msk.bf16.vlgmr.msra.gmra.mxu0 %vm565_vm5, %v559_v30 }
 0x390   : > { %v603_v34 = vpop.f32.mrf.mxu0 }
 0x391   : > { %v604_v35 = vadd.f32 %v603_v34, %v564_v33 }
 0x392   : > { %v814_v36 = vpop.f32.mrf.mxu0 }
 0x393   : > { %v612_v37 = vsel %vm611_vm6, %v604_v35, -inf }
 0x394   : > { %613 = vmax.xlane.f32.xlu0 %v612_v37  ;;  %v606_v38 = vpop.f32.mrf.mxu0 }
 0x396   : > { %v815_v39 = vpop.f32.mrf.mxu0 }
 0x41d   : > { %v614_v40 = vpop.xlane.xlu0 %613 }
 0x41e   : > { %v615_v41 = vsub.f32 %v612_v37, %v614_v40 }
 0x420   : > { %v616_v42 = vmul.f32 1.442695, %v615_v41 }
 0x422   : > { %935 = vpow2.f32 %v616_v42 }
 0x42f   : > { %v936_v43 = vpop.eup %935 }
 0x430   : > { %618 = vadd.xlane.f32.xlu0 %v936_v43 }
 0x4b9   : > { %v619_v44 = vpop.xlane.xlu0 %618 }
 0x4ba   : > { %937 = vlog2.f32 %v619_v44 }
 0x4c7   : > { %v938_v45 = vpop.eup %937 }
 0x4c8   : > { %v621_v46 = vmul.f32 0.6931472, %v938_v45 }
 0x4ca   : > { %v622_v47 = vsub.f32 %v615_v41, %v621_v46 }
 0x4cc   : > { %623 = vst [vmem:[%s1363_s4] sm:$0xff] %v622_v47 }
 0x4cd PF: > { %s780_s25 = sshll.u32 %s1133_s24, 7  ;;  %s638_s30 = sshll.u32 %s1363_s4, 4  ;;  %s639_s30 = int_to_ptr.vmem [resolvable:$true] %s638_s30 }
 0x4ce   : > { %s636_s13 = scalar_lea.hbm %s1435_s6, %s780_s25  ;;  %s625_s1 = scalar_lea.sflag [#allocation6], %s1342_s2 }
 0x4cf   : > { %s1045_s7 = scalar_lea.vmem %s639_s30, 128  ;;  %s1165_s9 = smov [#allocation12]  }
 0x4d0   : > { %p1046_p2 = scmp.ne.s32.totalorder %s639_s30, %s1045_s7  ;;  %s1049_s11 = sshll.u32 %s1165_s9, 4  ;;  %s1050_s11 = int_to_ptr.vmem [resolvable:$false] %s1049_s11 }
 0x4d1   : > { %s1051_s12 = scalar_lea.vmem %s1050_s11, 256  ;;  %p1052_p12 = scmp.lt.s32.totalorder %s639_s30, %s1050_s11 }
 0x4d2   : > { %p1047_p6 = pnand %p1046_p2, %p1316_p5  ;;  %p1053_p1 = scmp.lt.s32.totalorder %s1051_s12, %s1045_s7 }
 0x4d4   : > { %p1048_p9 = pneg %p1047_p6  ;;  %p1054_p4 = por %p1053_p1, %p1052_p12 }
 0x4d6   : > { %p1055_p8 = pnand %p1054_p4, %p1048_p9 }
 0x4d8   : > { %1058 = shalt.err (!%p1055_p8)
}
 0x4d9   : > { %s1059_s24 = scalar_lea.hbm %s636_s13, 128  ;;  %s1063_s16 = scalar_lea.hbm %s1435_s6, 256 }
 0x4da   : > { %p1060_p11 = scmp.ne.s32.totalorder %s636_s13, %s1059_s24  ;;  %p1064_p0 = scmp.lt.s32.totalorder %s636_s13, %s1435_s6 }
 0x4db   : > { %p1065_p10 = scmp.lt.s32.totalorder %s1063_s16, %s1059_s24 }
 0x4dc   : > { %p1061_p13 = pnand %p1060_p11, %p1316_p5 }
 0x4dd   : > { %p1066_p7 = por %p1065_p10, %p1064_p0 }
 0x4de   : > { %p1062_p3 = pneg %p1061_p13 }
 0x4e0   : > { %p1067_p2 = pnand %p1066_p7, %p1062_p3 }
 0x4e2   : > { %1070 = shalt.err (!%p1067_p2)
}
 0x4e3   : > { %830 = dma.vmem_to_hbm [thread:$0]  (%p1316_p5), %s639_s30, 128, %s636_s13, %s625_s1  }
 0x4e4 PF: > { %p857_p6 = scmp.ge.s32.totalorder %s1149_s28, 2  ;;  %s650_s8 = sand.u32 1, %s1121_s21  }
 0x4e5   : > { %p1460_p9 = scmp.ne.s32.totalorder %s1447_s10, 0  ;;  %s651_s17 = scalar_lea.sflag [#allocation6], %s650_s8 }
 0x4e7   : > { %p847_p12 = pnand %p857_p6, %p1460_p9 }
 0x4e9   : > { %p848_p1 = pneg %p847_p12 }
 0x4eb   : > { %1116 = dma.done.wait (%p848_p1), %s651_s17, 128  }
 0x4ec   : > { %1118 = vsyncadd (%p848_p1), %s651_s17, 4294967168  ;;  %s24_s28 = sadd.s32 1, %s1149_s28   ;;  %s1461_s14 = sld [smem:[#allocation17_spill]] }
 0x4ed   : > { %p21_p4 = scmp.ge.s32.totalorder %s24_s28, 6   ;;  %s1462_s20 = sld [smem:[#allocation18_spill]] }
 0x4ee   : > { %s1463_s21 = smov %s1125_s22  ;;  %s1464_s22 = smov %s1129_s23 }
 0x4ef   : > { %s1465_s23 = smov %s1323_s18  ;;  %s1466_s24 = smov %s1141_s26 }
 0x4f0   : > { %s1467_s25 = smov %s1145_s27  ;;  %23 = sbr.rel (!%p21_p4) target bundleno = 13 (0xd), region = 113 }
 0x4f2   : > { %s1468_s26 = smov %s1461_s14 }
 0x4f3   : > { %s1469_s27 = smov %s1462_s20 }
 0x4f5   :  { %656 = vsyncpa [#allocation5], 1 }
 0x4f6   :  { %658 = vsyncpa [#allocation5 + $0x1], 1 }
 0x4f7   :  { %659 = vsyncpa [#allocation8], 1 }
 0x4f8   :  { %660 = vsyncpa [#allocation11], 1 }
 0x4f9   :  { %661 = vsyncpa [#allocation6], 1 }
 0x4fa   :  { %663 = vsyncpa [#allocation6 + $0x1], 1 }

</bundles_post_ra>
